<compile_context>
chip_gen: v5e
topology: v5e:2x2
jax: 0.10.0
libtpu: 0.0.40
codegen_flags: <defaults>
</compile_context>

<pallas_src>
import functools

import jax
import jax.numpy as jnp
from jax.experimental import pallas as pl
from jax.experimental.pallas import tpu as pltpu


def _round_up(n, m):
    return ((n + m - 1) // m) * m


def _rnn_kernel(x_ref, h_ref, wx_ref, wh_ref, b_ref, out_ref, *,
                hidden_size, output_size):
    """Fused i2h + i2o linear layers + sigmoid for one block of timestep rows.

    x_ref  : (TB, I)  f32   block of input rows (independent timesteps)
    h_ref  : (1, H)   f32   the module's zero hidden buffer (constant)
    wx_ref : (I, NP)  bf16  fused [W_i2h.T | W_i2o.T | 0-pad] rows for x
    wh_ref : (H, NP)  bf16  fused weight rows for the hidden buffer
    b_ref  : (1, NP)  f32   fused, 128-lane-padded bias
    out_ref: (TB, NP) f32   lane-dense slab [hidden(H) | sigmoid(out)(O) | 0]
    """
    xb = x_ref[...].astype(jnp.bfloat16)                          # (TB, I)
    hb = jnp.broadcast_to(h_ref[...].astype(jnp.bfloat16),
                          (xb.shape[0], h_ref.shape[1]))          # (TB, H)
    # Single fused projection (both Linear layers at once), f32 MXU accumulate.
    y = jnp.dot(xb, wx_ref[...], preferred_element_type=jnp.float32)
    y = y + jnp.dot(hb, wh_ref[...], preferred_element_type=jnp.float32)
    y = y + b_ref[...]                                            # f32 epilogue
    lane = jax.lax.broadcasted_iota(jnp.int32, y.shape, 1)
    is_out = (lane >= hidden_size) & (lane < hidden_size + output_size)
    # hidden lanes stay linear, output lanes get sigmoid, pad lanes remain 0.
    out_ref[...] = jnp.where(is_out, jax.nn.sigmoid(y), y)


def prepare_rnn_params(w_i2h, b_i2h, w_i2o, b_i2o, input_size):
    """One-time param prep (hoisted out of the forward path).

    Returns (wx, wh, b_fused):
      wx      : (I, NP) bf16   fused weight rows multiplied by x
      wh      : (H, NP) bf16   fused weight rows multiplied by the hidden buf
      b_fused : (1, NP) f32    fused bias
    with NP = round_up(H + O, 128) so kernel stores are lane-dense.
    """
    H, C = w_i2h.shape
    O = w_i2o.shape[0]
    I = input_size
    assert C == I + H and w_i2o.shape[1] == C
    NP = _round_up(H + O, 128)
    w_fused = jnp.concatenate([w_i2h.T, w_i2o.T], axis=1)          # (C, H+O)
    w_fused = jnp.pad(w_fused, ((0, 0), (0, NP - (H + O))))        # (C, NP)
    wx = w_fused[:I, :].astype(jnp.bfloat16)                       # (I, NP)
    wh = w_fused[I:, :].astype(jnp.bfloat16)                       # (H, NP)
    b_fused = jnp.concatenate([b_i2h, b_i2o]).reshape(1, H + O)
    b_fused = jnp.pad(b_fused, ((0, 0), (0, NP - (H + O)))).astype(jnp.float32)
    return wx, wh, b_fused


def rnn_forward(x, hidden_buf, wx, wh, b_fused, *, hidden_size, output_size):
    """Sequence-level forward: applies the module's forward() to every row of x.

    x          : (T, I) f32 — T independent timesteps (T=1 == original module)
    hidden_buf : (1, H) f32 — the module's `self.hidden_size` zeros buffer
    wx/wh/b_fused : pre-fused params from prepare_rnn_params
    returns (output (T, O), hidden (T, H))
    """
    T, I = x.shape
    H, O = hidden_size, output_size
    NP = b_fused.shape[1]

    TB = min(512, _round_up(T, 8))            # rows per grid block (8-aligned)
    T_pad = _round_up(T, TB)
    x_in = x if T_pad == T else jnp.pad(x, ((0, T_pad - T), (0, 0)))

    kernel = functools.partial(_rnn_kernel, hidden_size=H, output_size=O)
    cost = pl.CostEstimate(
        flops=2 * T_pad * (I + H) * NP,
        transcendentals=T_pad * NP,
        bytes_accessed=(x_in.size * 4 + hidden_buf.size * 4
                        + wx.size * 2 + wh.size * 2 + b_fused.size * 4
                        + T_pad * NP * 4),
    )

    slab = pl.pallas_call(
        kernel,
        out_shape=jax.ShapeDtypeStruct((T_pad, NP), jnp.float32),
        grid=(T_pad // TB,),
        in_specs=[
            pl.BlockSpec((TB, I), lambda i: (i, 0)),    # per-block x rows
            pl.BlockSpec((1, H), lambda i: (0, 0)),     # pinned in VMEM
            pl.BlockSpec((I, NP), lambda i: (0, 0)),    # pinned in VMEM
            pl.BlockSpec((H, NP), lambda i: (0, 0)),    # pinned in VMEM
            pl.BlockSpec((1, NP), lambda i: (0, 0)),    # pinned in VMEM
        ],
        out_specs=pl.BlockSpec((TB, NP), lambda i: (i, 0)),  # lane-dense slab
        compiler_params=pltpu.CompilerParams(
            dimension_semantics=("parallel",)),         # blocks are independent
        cost_estimate=cost,
    )(x_in, hidden_buf, wx, wh, b_fused)

    hidden = slab[:T, :H]
    output = slab[:T, H:H + O]
    # TODO(synk): if the recurrence is ever made real (hidden fed back each
    # step), switch the time axis to "arbitrary" and carry the hidden state in
    # a VMEM scratch accumulator (or alias it via input_output_aliases).
    return output, hidden


def _torch_like_linear_init(key, out_features, in_features):
    """Matches nn.Linear's default U(-1/sqrt(fan_in), 1/sqrt(fan_in)) init."""
    kw, kb = jax.random.split(key)
    bound = 1.0 / jnp.sqrt(jnp.float32(in_features))
    w = jax.random.uniform(kw, (out_features, in_features), jnp.float32,
                           minval=-bound, maxval=bound)
    b = jax.random.uniform(kb, (out_features,), jnp.float32,
                           minval=-bound, maxval=bound)
    return w, b


if __name__ == "__main__":
    INPUT_SIZE = 16
    HIDDEN_SIZE = 32
    OUTPUT_SIZE = 8
    SEQ = 8   # independent timesteps handled by ONE sequence-level kernel call

    key = jax.random.PRNGKey(0)
    k_x, k_h, k_o = jax.random.split(key, 3)

    x = jax.random.normal(k_x, (SEQ, INPUT_SIZE), jnp.float32)
    hidden_buf = jnp.zeros((1, HIDDEN_SIZE), jnp.float32)  # self.hidden_size buffer

    w_i2h, b_i2h = _torch_like_linear_init(k_h, HIDDEN_SIZE, INPUT_SIZE + HIDDEN_SIZE)
    w_i2o, b_i2o = _torch_like_linear_init(k_o, OUTPUT_SIZE, INPUT_SIZE + HIDDEN_SIZE)

    # One-time hoisted prep: transpose + fuse + 128-lane pad + bf16 cast.
    wx, wh, b_fused = prepare_rnn_params(w_i2h, b_i2h, w_i2o, b_i2o, INPUT_SIZE)

    fwd = jax.jit(functools.partial(rnn_forward,
                                    hidden_size=HIDDEN_SIZE,
                                    output_size=OUTPUT_SIZE))
    output, hidden = fwd(x, hidden_buf, wx, wh, b_fused)
    jax.block_until_ready((output, hidden))

    # Pure-JAX f32 reference of the original module math, applied per row.
    combined = jnp.concatenate(
        [x, jnp.broadcast_to(hidden_buf, (SEQ, HIDDEN_SIZE))], axis=1)
    ref_hidden = combined @ w_i2h.T + b_i2h
    ref_output = jax.nn.sigmoid(combined @ w_i2o.T + b_i2o)

    assert output.shape == (SEQ, OUTPUT_SIZE) and hidden.shape == (SEQ, HIDDEN_SIZE)
    # bf16 matmul operands (f32 accumulate) -> bf16-appropriate tolerance vs f32 ref.
    assert jnp.allclose(output, ref_output, atol=2e-2, rtol=2e-2)
    assert jnp.allclose(hidden, ref_hidden, atol=2e-2, rtol=2e-2)

    print("KERNEL_OK")
</pallas_src>

<mosaic_0001>
module attributes {stable_mosaic.version = 11 : i64} {
  func.func @_rnn_kernel(%arg0: i32, %arg1: memref<8x16xf32, #tpu.memory_space<vmem>>, %arg2: memref<1x32xf32, #tpu.memory_space<vmem>>, %arg3: memref<16x128xbf16, #tpu.memory_space<vmem>>, %arg4: memref<32x128xbf16, #tpu.memory_space<vmem>>, %arg5: memref<1x128xf32, #tpu.memory_space<vmem>>, %arg6: memref<8x128xf32, #tpu.memory_space<vmem>>) attributes {dimension_semantics = [#tpu.dimension_semantics<parallel>], iteration_bounds = array<i64: 1>, scalar_prefetch = 0 : i64, scratch_operands = 0 : i64, tpu.core_type = #tpu.core_type<tc>, window_params = [{transform_indices = @transform_0, window_bounds = array<i64: 8, 16>}, {pipeline_mode = #tpu.pipeline_mode<synchronous>, transform_indices = @transform_1, window_bounds = array<i64: 1, 32>}, {pipeline_mode = #tpu.pipeline_mode<synchronous>, transform_indices = @transform_2, window_bounds = array<i64: 16, 128>}, {pipeline_mode = #tpu.pipeline_mode<synchronous>, transform_indices = @transform_3, window_bounds = array<i64: 32, 128>}, {pipeline_mode = #tpu.pipeline_mode<synchronous>, transform_indices = @transform_4, window_bounds = array<i64: 1, 128>}, {transform_indices = @transform_5, window_bounds = array<i64: 8, 128>}]} {
    %c0 = arith.constant 0 : index
    %c0_0 = arith.constant 0 : index
    %0 = vector.load %arg1[%c0, %c0_0] : memref<8x16xf32, #tpu.memory_space<vmem>>, vector<8x16xf32>
    %1 = arith.truncf %0 : vector<8x16xf32> to vector<8x16xbf16>
    %c0_1 = arith.constant 0 : index
    %c0_2 = arith.constant 0 : index
    %2 = vector.load %arg2[%c0_1, %c0_2] : memref<1x32xf32, #tpu.memory_space<vmem>>, vector<1x32xf32>
    %3 = arith.truncf %2 : vector<1x32xf32> to vector<1x32xbf16>
    %4 = vector.shape_cast %3 : vector<1x32xbf16> to vector<1x32xbf16>
    %5 = vector.broadcast %4 : vector<1x32xbf16> to vector<8x32xbf16>
    %c0_3 = arith.constant 0 : index
    %c0_4 = arith.constant 0 : index
    %6 = vector.load %arg3[%c0_3, %c0_4] : memref<16x128xbf16, #tpu.memory_space<vmem>>, vector<16x128xbf16>
    %cst = arith.constant dense<0.000000e+00> : vector<8x128xf32>
    %7 = tpu.matmul %1, %6, %cst {dimension_numbers = #tpu.dot_dimension_numbers<[1], [0], [0], [1], [0, 0, 1, 1], [], []>} : vector<8x16xbf16>, vector<16x128xbf16>, vector<8x128xf32> -> vector<8x128xf32>
    %c0_5 = arith.constant 0 : index
    %c0_6 = arith.constant 0 : index
    %8 = vector.load %arg4[%c0_5, %c0_6] : memref<32x128xbf16, #tpu.memory_space<vmem>>, vector<32x128xbf16>
    %cst_7 = arith.constant dense<0.000000e+00> : vector<8x128xf32>
    %9 = tpu.matmul %5, %8, %cst_7 {dimension_numbers = #tpu.dot_dimension_numbers<[1], [0], [0], [1], [0, 0, 1, 1], [], []>} : vector<8x32xbf16>, vector<32x128xbf16>, vector<8x128xf32> -> vector<8x128xf32>
    %10 = arith.addf %7, %9 : vector<8x128xf32>
    %c0_8 = arith.constant 0 : index
    %c0_9 = arith.constant 0 : index
    %11 = vector.load %arg5[%c0_8, %c0_9] : memref<1x128xf32, #tpu.memory_space<vmem>>, vector<1x128xf32>
    %12 = vector.broadcast %11 : vector<1x128xf32> to vector<8x128xf32>
    %13 = arith.addf %10, %12 : vector<8x128xf32>
    %14 = tpu.iota {dimensions = array<i32: 1>} : vector<8x128xi32>
    %c32_i32 = arith.constant 32 : i32
    %15 = vector.broadcast %c32_i32 : i32 to vector<8x128xi32>
    %16 = arith.cmpi sge, %14, %15 : vector<8x128xi32>
    %c40_i32 = arith.constant 40 : i32
    %17 = vector.broadcast %c40_i32 : i32 to vector<8x128xi32>
    %18 = arith.cmpi slt, %14, %17 : vector<8x128xi32>
    %19 = arith.andi %16, %18 : vector<8x128xi1>
    %20 = arith.negf %13 : vector<8x128xf32>
    %21 = math.exp %20 : vector<8x128xf32>
    %cst_10 = arith.constant 1.000000e+00 : f32
    %22 = vector.broadcast %cst_10 : f32 to vector<8x128xf32>
    %23 = arith.addf %22, %21 : vector<8x128xf32>
    %24 = arith.divf %22, %23 : vector<8x128xf32>
    %25 = arith.select %19, %24, %13 : vector<8x128xi1>, vector<8x128xf32>
    %c0_11 = arith.constant 0 : index
    %c0_12 = arith.constant 0 : index
    %26 = vector.load %arg6[%c0_11, %c0_12] : memref<8x128xf32, #tpu.memory_space<vmem>>, vector<8x128xf32>
    tpu.vector_store %arg6[%c0_11, %c0_12], %25 {strides = array<i32>} : memref<8x128xf32, #tpu.memory_space<vmem>>, vector<8x128xf32>,
    return
  }
  func.func @transform_0(%arg0: i32) -> (i32, i32) {
    %c0_i32 = arith.constant 0 : i32
    %c0_i32_0 = arith.constant 0 : i32
    return %arg0, %c0_i32 : i32, i32
  }
  func.func @transform_1(%arg0: i32) -> (i32, i32) {
    %c0_i32 = arith.constant 0 : i32
    %c0_i32_0 = arith.constant 0 : i32
    %c0_i32_1 = arith.constant 0 : i32
    return %c0_i32, %c0_i32_0 : i32, i32
  }
  func.func @transform_2(%arg0: i32) -> (i32, i32) {
    %c0_i32 = arith.constant 0 : i32
    %c0_i32_0 = arith.constant 0 : i32
    %c0_i32_1 = arith.constant 0 : i32
    return %c0_i32, %c0_i32_0 : i32, i32
  }
  func.func @transform_3(%arg0: i32) -> (i32, i32) {
    %c0_i32 = arith.constant 0 : i32
    %c0_i32_0 = arith.constant 0 : i32
    %c0_i32_1 = arith.constant 0 : i32
    return %c0_i32, %c0_i32_0 : i32, i32
  }
  func.func @transform_4(%arg0: i32) -> (i32, i32) {
    %c0_i32 = arith.constant 0 : i32
    %c0_i32_0 = arith.constant 0 : i32
    %c0_i32_1 = arith.constant 0 : i32
    return %c0_i32, %c0_i32_0 : i32, i32
  }
  func.func @transform_5(%arg0: i32) -> (i32, i32) {
    %c0_i32 = arith.constant 0 : i32
    %c0_i32_0 = arith.constant 0 : i32
    return %arg0, %c0_i32 : i32, i32
  }
}

</mosaic_0001>

<bundles_post_ra>
// kernel: rnn_forward.1
= control target key start
LH: loop header
LB: loop body
LE: loop exit
PB: predicated region body
PF: predicated region fallthrough
CT: control target
= control target key end

     0   :  { %10 = vsyncpa [#allocation3], 0  ;;  %s369_s0 = inlined_call_operand.hbm [shape: f32[8,16], index: 0, kind: input, shape index: {}]   ;;  %s370_s1 = inlined_call_operand.hbm [shape: f32[1,32], index: 1, kind: input, shape index: {}]   ;;  %s371_s2 = inlined_call_operand.hbm [shape: bf16[16,128], index: 2, kind: input, shape index: {}]   ;;  %s372_s3 = inlined_call_operand.hbm [shape: bf16[32,128], index: 3, kind: input, shape index: {}]   ;;  %s373_s4 = inlined_call_operand.vmem [shape: f32[1,128], index: 4, kind: input, shape index: {}]   ;;  %s374_s5 = inlined_call_operand.vmem [shape: f32[8,128], index: 5, kind: output, shape index: {}]  }
   0x1   :  { %11 = vsyncpa [#allocation5], 0  ;;  %s29_s20 = sshll.u32 %s370_s1, 4  ;;  %s30_s20 = int_to_ptr.hbm [resolvable:$true] %s29_s20 }
   0x2   :  { %12 = vsyncpa [#allocation8], 0  ;;  %s315_s21 = smov [#allocation4]   ;;  %s18_s25 = sshll.u32 %s369_s0, 4  ;;  %s19_s25 = int_to_ptr.hbm [resolvable:$true] %s18_s25 }
   0x3   :  { %s31_s22 = sshll.u32 %s315_s21, 4  ;;  %s316_s26 = smov [#allocation2]   ;;  %s32_s22 = int_to_ptr.vmem [resolvable:$true] %s31_s22 }
   0x4   :  { %34 = dma.hbm_to_vmem [thread:$0]  %s30_s20, 16, %s32_s22, [#allocation5]  }
   0x5   :  { %s20_s27 = sshll.u32 %s316_s26, 4  ;;  %s39_s30 = sshll.u32 %s371_s2, 4  ;;  %s21_s27 = int_to_ptr.vmem [resolvable:$true] %s20_s27  ;;  %s40_s30 = int_to_ptr.hbm [resolvable:$true] %s39_s30 }
   0x6   :  { %23 = dma.hbm_to_vmem [thread:$0]  %s19_s25, 128, %s21_s27, [#allocation3]  }
   0x7   :  { %s317_s1 = smov [#allocation6]   ;;  %s52_s9 = sshll.u32 %s372_s3, 4  ;;  %s53_s9 = int_to_ptr.hbm [resolvable:$true] %s52_s9 }
   0x8   :  { %s41_s6 = sshll.u32 %s317_s1, 4  ;;  %s318_s10 = smov 64   ;;  %s42_s6 = int_to_ptr.vmem [resolvable:$true] %s41_s6 }
   0x9   :  { %s319_s0 = smov 4   ;;  %s320_s11 = smov [#allocation7]  }
   0xa   :  { %47 = dma.hbm_to_vmem [thread:$0]  %s40_s30, 128, %s42_s6, [#allocation5], %s318_s10, %s318_s10, %s319_s0  }
   0xb   :  { %s54_s12 = sshll.u32 %s320_s11, 4  ;;  %s55_s12 = int_to_ptr.vmem [resolvable:$true] %s54_s12 }
   0xc   :  { %60 = dma.hbm_to_vmem [thread:$0]  %s53_s9, 256, %s55_s12, [#allocation8], %s318_s10, %s318_s10, %s319_s0  }
   0xd   :  { %309 = dma.done.wait [#allocation3], 128  }
   0xe   :  { %310 = vsyncadd [#allocation3], 4294967168 }
   0xf   :  { %311 = dma.done.wait [#allocation5], 144  }
  0x10   :  { %312 = vsyncadd [#allocation5], 4294967152 }
  0x11   :  { %313 = dma.done.wait [#allocation8], 256  }
  0x12   :  { %314 = vsyncadd [#allocation8], 4294967040  ;;  %v201_v0 = vld [vmem:[#allocation7 + $0x8] sm:$0xff]  ;;  %v199_v1 = vld [vmem:[#allocation6] sm:$0xff]  ;;  %vm129_vm0 = vcmask 130048   ;;  %vm106_vm1 = vcmask 261120   ;;  %v151_v19 = vlaneseq }
  0x13   :  { %v80_v2 = vld [vmem:[#allocation2] sm:$0xff]  ;;  %v82_v4 = vld [vmem:[#allocation4] sm:$0x1]  ;;  %116 = vmatpush.bf16.msra.mxu0 %v201_v0  ;;  %140 = vmatpush.bf16.msra.mxu1 %v199_v1  ;;  %v200_v5 = vld [vmem:[#allocation7] sm:$0xff] }
  0x14   :  { %v81_v3 = vpack.c.bf16 %v80_v2, %v80_v2  ;;  %v83_v6 = vpack.c.bf16 %v82_v4, %v82_v4  ;;  %v208_v10 = vld [vmem:[%s373_s4] ss:$0 sm:$0xff]  ;;  %v152_v21 = vand.u32 127, %v151_v19 }
  0x16   :  { %v85_v7 = vpack.i.b16 %v83_v6, %v83_v6  ;;  %197 = vmatmul.msk.bf16.vlgmr.msra.gmra.mxu1 %vm129_vm0, %v81_v3  ;;  %vm153_vm2 = vcmp.ge.s32.totalorder %v152_v21, 32  ;;  %vm154_vm3 = vcmp.lt.s32.totalorder %v152_v21, 40 }
  0x17   :  { %117 = vmatpush.bf16.msra.mxu0 %v200_v5  ;;  %vm155_vm5 = vmand %vm153_vm2, %vm154_vm3 }
  0x18   :  { %v87_v8 = vperm.slane %v85_v7, 0 }
  0x1a   :  { %192 = vmatmul.msk.bf16.vlgmr.msra.gmra.mxu0 %vm106_vm1, %v87_v8 }
  0x93   :  { %v142_v9 = vpop.f32.mrf.mxu1 }
  0x97   :  { %v119_v11 = vpop.f32.mrf.mxu0 }
  0x98   :  { %v143_v12 = vadd.f32 %v142_v9, %v119_v11 }
  0x9a   :  { %v150_v13 = vadd.f32 %v208_v10, %v143_v12 }
  0x9b   :  { %v144_v14 = vpop.f32.mrf.mxu1 }
  0x9c   :  { %v198_v15 = vmul.f32 -1.442695, %v150_v13 }
  0x9e   :  { %209 = vpow2.f32 %v198_v15 }
  0x9f   :  { %v121_v16 = vpop.f32.mrf.mxu0 }
  0xa4   :  { %v210_v17 = vpop.eup %209 }
  0xa5   :  { %v159_v18 = vadd.f32 1.0, %v210_v17 }
  0xa7   :  { %211 = vrcp.f32 %v159_v18  ;;  %v171_v24 = vand.u32 2147483648, %v159_v18  ;;  %v169_v26 = vand.u32 2147483647, %v159_v18  ;;  %vm165_vm6 = vweird.f32 %v159_v18 }
  0xa9   :  { %v172_v28 = vor.u32 1.1754944e-38, %v171_v24  ;;  %vm170_vm8 = vcmp.eq.f32.partialorder %v169_v26, 8.507059e+37 }
  0xad   :  { %v212_v20 = vpop.eup %211 }
  0xae   :  { %v161_v22 = vmul.f32 %v212_v20, %v159_v18  ;;  %vm166_vm4 = vweird.f32 %v212_v20 }
  0xaf   :  { %vm167_vm7 = vmor %vm165_vm6, %vm166_vm4 }
  0xb0   :  { %v162_v23 = vsub.f32 1.0, %v161_v22 }
  0xb2   :  { %v163_v25 = vmul.f32 %v212_v20, %v162_v23 }
  0xb4   :  { %v164_v27 = vadd.f32 %v212_v20, %v163_v25 }
  0xb6   :  { %v168_v29 = vsel %vm167_vm7, %v212_v20, %v164_v27 }
  0xb7   :  { %v173_v30 = vsel %vm170_vm8, %v172_v28, %v168_v29 }
  0xb8   :  { %v175_v31 = vsel %vm155_vm5, %v173_v30, %v150_v13 }
  0xb9   :  { %176 = vst [vmem:[%s374_s5] sm:$0xff] %v175_v31 }
  0xba   :  { %181 = vsyncpa [#allocation3], 1 }
  0xbb   :  { %182 = vsyncpa [#allocation5], 1 }
  0xbc   :  { %183 = vsyncpa [#allocation8], 1 }

</bundles_post_ra>
